<compile_context>
chip_gen: v7x
topology: tpu7x:2x2x1
jax: 0.10.0
libtpu: 0.0.40
codegen_flags: <defaults>
</compile_context>

<pallas_src>
import jax
import jax.numpy as jnp
from jax.experimental import pallas as pl
from jax.experimental.pallas import tpu as pltpu

LANE = 128      # TPU vreg lane width
TILE_M = 256    # batch tile: multiple of 128 (v5e MXU rows) and 256 (v6e/v7x)


def _round_up(x, m):
    return (x + m - 1) // m * m


def _pad2(a, rows, cols):
    return jnp.pad(a, ((0, rows - a.shape[0]), (0, cols - a.shape[1])))


def mlp_kernel(x_ref, w1_ref, b1_ref, w2_ref, b2_ref, w3_ref, b3_ref, o_ref):
    # x tile for this grid step; weights/biases are the same resident block
    # every step (index_map -> (0, 0)), so they are loaded from HBM only once.
    x = x_ref[...]

    # fc1 + ReLU  (MXU matmul, f32 accumulation; epilogue in f32)
    h1 = jnp.dot(x, w1_ref[...], preferred_element_type=jnp.float32)
    h1 = jnp.maximum(h1 + b1_ref[...], 0.0)

    # fc2 + ReLU
    h2 = jnp.dot(h1.astype(w2_ref.dtype), w2_ref[...],
                 preferred_element_type=jnp.float32)
    h2 = jnp.maximum(h2 + b2_ref[...], 0.0)

    # fc3 (no activation); output block is lane-dense (padded to 128) so the
    # store is a full, unmasked vst.
    h3 = jnp.dot(h2.astype(w3_ref.dtype), w3_ref[...],
                 preferred_element_type=jnp.float32)
    o_ref[...] = (h3 + b3_ref[...]).astype(o_ref.dtype)


def mlp_forward(x, params, *, compute_dtype=jnp.float32, tile_m=TILE_M):
    """x: (B, input_dim) float32. params: dict of w1,b1,w2,b2,w3,b3 (unpadded).

    compute_dtype: dtype fed to the MXU (jnp.float32 or jnp.bfloat16).
    Accumulation and the bias/ReLU epilogue are always float32.
    """
    B, in_dim = x.shape
    h1 = params["w1"].shape[1]
    h2 = params["w2"].shape[1]
    out_dim = params["w3"].shape[1]

    # Lane-pad feature dims; tile-pad the batch.
    h1_p = _round_up(h1, LANE)
    h2_p = _round_up(h2, LANE)
    out_p = _round_up(out_dim, LANE)
    b_p = _round_up(B, tile_m)

    xd = _pad2(x, b_p, in_dim).astype(compute_dtype)
    w1 = _pad2(params["w1"], in_dim, h1_p).astype(compute_dtype)
    w2 = _pad2(params["w2"], h1_p, h2_p).astype(compute_dtype)
    w3 = _pad2(params["w3"], h2_p, out_p).astype(compute_dtype)
    # Padded bias entries must be exactly 0 (f32 epilogue).
    b1 = _pad2(params["b1"], 1, h1_p).astype(jnp.float32)
    b2 = _pad2(params["b2"], 1, h2_p).astype(jnp.float32)
    b3 = _pad2(params["b3"], 1, out_p).astype(jnp.float32)

    grid = (b_p // tile_m,)

    # VMEM budget (generous headroom, still << v7x's 64 MiB physical):
    # resident weights ~ (in*h1_p + h1_p*h2_p + h2_p*out_p)*4  ~= 130 KiB
    # double-buffered x + out tiles ~ 2*(tile_m*in + tile_m*out_p)*4 ~= 270 KiB
    vmem_limit = 32 * 1024 * 1024

    out_padded = pl.pallas_call(
        mlp_kernel,
        out_shape=jax.ShapeDtypeStruct((b_p, out_p), jnp.float32),
        grid_spec=pltpu.PrefetchScalarGridSpec(
            num_scalar_prefetch=0,
            grid=grid,
            in_specs=[
                pl.BlockSpec((tile_m, in_dim), lambda i: (i, 0)),  # x (streamed)
                pl.BlockSpec((in_dim, h1_p), lambda i: (0, 0)),    # w1 (resident)
                pl.BlockSpec((1, h1_p), lambda i: (0, 0)),         # b1
                pl.BlockSpec((h1_p, h2_p), lambda i: (0, 0)),      # w2
                pl.BlockSpec((1, h2_p), lambda i: (0, 0)),         # b2
                pl.BlockSpec((h2_p, out_p), lambda i: (0, 0)),     # w3
                pl.BlockSpec((1, out_p), lambda i: (0, 0)),        # b3
            ],
            out_specs=pl.BlockSpec((tile_m, out_p), lambda i: (i, 0)),
        ),
        compiler_params=pltpu.CompilerParams(
            dimension_semantics=("parallel",),   # megacore-shard batch tiles
            vmem_limit_bytes=vmem_limit,
        ),
    )(xd, w1, b1, w2, b2, w3, b3)

    # Strip batch and lane padding.
    return out_padded[:B, :out_dim]


def init_params(key, input_dim=3, output_dim=4):
    """Deterministic init mimicking PyTorch nn.Linear default U(-1/sqrt(fan_in), +)."""
    dims = [(input_dim, 64), (64, 32), (32, output_dim)]
    params = {}
    for i, (fan_in, fan_out) in enumerate(dims, start=1):
        key, kw, kb = jax.random.split(key, 3)
        bound = 1.0 / (fan_in ** 0.5)
        # stored as (in, out) so forward is x @ W + b
        params[f"w{i}"] = jax.random.uniform(
            kw, (fan_in, fan_out), jnp.float32, -bound, bound)
        params[f"b{i}"] = jax.random.uniform(
            kb, (1, fan_out), jnp.float32, -bound, bound)
    return params


def mlp_reference(x, params):
    h1 = jnp.maximum(x @ params["w1"] + params["b1"], 0.0)
    h2 = jnp.maximum(h1 @ params["w2"] + params["b2"], 0.0)
    return h2 @ params["w3"] + params["b3"]


if __name__ == "__main__":
    key = jax.random.PRNGKey(0)
    key, kx = jax.random.split(key)

    batch, input_dim, output_dim = 8, 3, 4
    x = jax.random.normal(kx, (batch, input_dim), jnp.float32)
    params = init_params(key, input_dim=input_dim, output_dim=output_dim)

    ref = mlp_reference(x, params)

    # f32 MXU path (exact to reference tolerance)
    out_f32 = jax.block_until_ready(mlp_forward(x, params))
    assert out_f32.shape == (batch, output_dim)
    assert jnp.allclose(out_f32, ref, atol=1e-5, rtol=1e-5)

    # bf16 MXU-input path (v6e/v7x perf lever; f32 accumulation & epilogue)
    out_bf16 = jax.block_until_ready(
        mlp_forward(x, params, compute_dtype=jnp.bfloat16))
    assert out_bf16.shape == (batch, output_dim)
    assert jnp.allclose(out_bf16, ref, atol=5e-2, rtol=5e-2)

    # NOTE: at these toy shapes plain jitted XLA is just as fast; the kernel
    # pays off once batch is large enough to be MXU- or HBM-bound.
    print("KERNEL_OK")
</pallas_src>

<mosaic_0001>
module attributes {stable_mosaic.version = 11 : i64} {
  func.func @mlp_kernel(%arg0: i32, %arg1: memref<256x3xf32, #tpu.memory_space<vmem>>, %arg2: memref<3x128xf32, #tpu.memory_space<vmem>>, %arg3: memref<1x128xf32, #tpu.memory_space<vmem>>, %arg4: memref<128x128xf32, #tpu.memory_space<vmem>>, %arg5: memref<1x128xf32, #tpu.memory_space<vmem>>, %arg6: memref<128x128xf32, #tpu.memory_space<vmem>>, %arg7: memref<1x128xf32, #tpu.memory_space<vmem>>, %arg8: memref<256x128xf32, #tpu.memory_space<vmem>>) attributes {dimension_semantics = [#tpu.dimension_semantics<parallel>], iteration_bounds = array<i64: 1>, scalar_prefetch = 0 : i64, scratch_operands = 0 : i64, tpu.core_type = #tpu.core_type<tc>, window_params = [{transform_indices = @transform_0, window_bounds = array<i64: 256, 3>}, {pipeline_mode = #tpu.pipeline_mode<synchronous>, transform_indices = @transform_1, window_bounds = array<i64: 3, 128>}, {pipeline_mode = #tpu.pipeline_mode<synchronous>, transform_indices = @transform_2, window_bounds = array<i64: 1, 128>}, {pipeline_mode = #tpu.pipeline_mode<synchronous>, transform_indices = @transform_3, window_bounds = array<i64: 128, 128>}, {pipeline_mode = #tpu.pipeline_mode<synchronous>, transform_indices = @transform_4, window_bounds = array<i64: 1, 128>}, {pipeline_mode = #tpu.pipeline_mode<synchronous>, transform_indices = @transform_5, window_bounds = array<i64: 128, 128>}, {pipeline_mode = #tpu.pipeline_mode<synchronous>, transform_indices = @transform_6, window_bounds = array<i64: 1, 128>}, {transform_indices = @transform_7, window_bounds = array<i64: 256, 128>}]} {
    %c0 = arith.constant 0 : index
    %c0_0 = arith.constant 0 : index
    %0 = vector.load %arg1[%c0, %c0_0] : memref<256x3xf32, #tpu.memory_space<vmem>>, vector<256x3xf32>
    %c0_1 = arith.constant 0 : index
    %c0_2 = arith.constant 0 : index
    %1 = vector.load %arg2[%c0_1, %c0_2] : memref<3x128xf32, #tpu.memory_space<vmem>>, vector<3x128xf32>
    %cst = arith.constant dense<0.000000e+00> : vector<256x128xf32>
    %2 = tpu.matmul %0, %1, %cst {dimension_numbers = #tpu.dot_dimension_numbers<[1], [0], [0], [1], [0, 0, 1, 1], [], []>} : vector<256x3xf32>, vector<3x128xf32>, vector<256x128xf32> -> vector<256x128xf32>
    %c0_3 = arith.constant 0 : index
    %c0_4 = arith.constant 0 : index
    %3 = vector.load %arg3[%c0_3, %c0_4] : memref<1x128xf32, #tpu.memory_space<vmem>>, vector<1x128xf32>
    %4 = vector.broadcast %3 : vector<1x128xf32> to vector<256x128xf32>
    %5 = arith.addf %2, %4 : vector<256x128xf32>
    %cst_5 = arith.constant 0.000000e+00 : f32
    %6 = vector.broadcast %cst_5 : f32 to vector<256x128xf32>
    %7 = arith.maximumf %5, %6 : vector<256x128xf32>
    %c0_6 = arith.constant 0 : index
    %c0_7 = arith.constant 0 : index
    %8 = vector.load %arg4[%c0_6, %c0_7] : memref<128x128xf32, #tpu.memory_space<vmem>>, vector<128x128xf32>
    %cst_8 = arith.constant dense<0.000000e+00> : vector<256x128xf32>
    %9 = tpu.matmul %7, %8, %cst_8 {dimension_numbers = #tpu.dot_dimension_numbers<[1], [0], [0], [1], [0, 0, 1, 1], [], []>} : vector<256x128xf32>, vector<128x128xf32>, vector<256x128xf32> -> vector<256x128xf32>
    %c0_9 = arith.constant 0 : index
    %c0_10 = arith.constant 0 : index
    %10 = vector.load %arg5[%c0_9, %c0_10] : memref<1x128xf32, #tpu.memory_space<vmem>>, vector<1x128xf32>
    %11 = vector.broadcast %10 : vector<1x128xf32> to vector<256x128xf32>
    %12 = arith.addf %9, %11 : vector<256x128xf32>
    %cst_11 = arith.constant 0.000000e+00 : f32
    %13 = vector.broadcast %cst_11 : f32 to vector<256x128xf32>
    %14 = arith.maximumf %12, %13 : vector<256x128xf32>
    %c0_12 = arith.constant 0 : index
    %c0_13 = arith.constant 0 : index
    %15 = vector.load %arg6[%c0_12, %c0_13] : memref<128x128xf32, #tpu.memory_space<vmem>>, vector<128x128xf32>
    %cst_14 = arith.constant dense<0.000000e+00> : vector<256x128xf32>
    %16 = tpu.matmul %14, %15, %cst_14 {dimension_numbers = #tpu.dot_dimension_numbers<[1], [0], [0], [1], [0, 0, 1, 1], [], []>} : vector<256x128xf32>, vector<128x128xf32>, vector<256x128xf32> -> vector<256x128xf32>
    %c0_15 = arith.constant 0 : index
    %c0_16 = arith.constant 0 : index
    %17 = vector.load %arg7[%c0_15, %c0_16] : memref<1x128xf32, #tpu.memory_space<vmem>>, vector<1x128xf32>
    %18 = vector.broadcast %17 : vector<1x128xf32> to vector<256x128xf32>
    %19 = arith.addf %16, %18 : vector<256x128xf32>
    %c0_17 = arith.constant 0 : index
    %c0_18 = arith.constant 0 : index
    %20 = vector.load %arg8[%c0_17, %c0_18] : memref<256x128xf32, #tpu.memory_space<vmem>>, vector<256x128xf32>
    tpu.vector_store %arg8[%c0_17, %c0_18], %19 {strides = array<i32>} : memref<256x128xf32, #tpu.memory_space<vmem>>, vector<256x128xf32>,
    return
  }
  func.func @transform_0(%arg0: i32) -> (i32, i32) {
    %c0_i32 = arith.constant 0 : i32
    %c0_i32_0 = arith.constant 0 : i32
    return %arg0, %c0_i32 : i32, i32
  }
  func.func @transform_1(%arg0: i32) -> (i32, i32) {
    %c0_i32 = arith.constant 0 : i32
    %c0_i32_0 = arith.constant 0 : i32
    %c0_i32_1 = arith.constant 0 : i32
    return %c0_i32, %c0_i32_0 : i32, i32
  }
  func.func @transform_2(%arg0: i32) -> (i32, i32) {
    %c0_i32 = arith.constant 0 : i32
    %c0_i32_0 = arith.constant 0 : i32
    %c0_i32_1 = arith.constant 0 : i32
    return %c0_i32, %c0_i32_0 : i32, i32
  }
  func.func @transform_3(%arg0: i32) -> (i32, i32) {
    %c0_i32 = arith.constant 0 : i32
    %c0_i32_0 = arith.constant 0 : i32
    %c0_i32_1 = arith.constant 0 : i32
    return %c0_i32, %c0_i32_0 : i32, i32
  }
  func.func @transform_4(%arg0: i32) -> (i32, i32) {
    %c0_i32 = arith.constant 0 : i32
    %c0_i32_0 = arith.constant 0 : i32
    %c0_i32_1 = arith.constant 0 : i32
    return %c0_i32, %c0_i32_0 : i32, i32
  }
  func.func @transform_5(%arg0: i32) -> (i32, i32) {
    %c0_i32 = arith.constant 0 : i32
    %c0_i32_0 = arith.constant 0 : i32
    %c0_i32_1 = arith.constant 0 : i32
    return %c0_i32, %c0_i32_0 : i32, i32
  }
  func.func @transform_6(%arg0: i32) -> (i32, i32) {
    %c0_i32 = arith.constant 0 : i32
    %c0_i32_0 = arith.constant 0 : i32
    %c0_i32_1 = arith.constant 0 : i32
    return %c0_i32, %c0_i32_0 : i32, i32
  }
  func.func @transform_7(%arg0: i32) -> (i32, i32) {
    %c0_i32 = arith.constant 0 : i32
    %c0_i32_0 = arith.constant 0 : i32
    return %arg0, %c0_i32 : i32, i32
  }
}

</mosaic_0001>

<bundles_post_ra>
// kernel: tpu_custom_call.1
= control target key start
LH: loop header
LB: loop body
LE: loop exit
PB: predicated region body
PF: predicated region fallthrough
CT: control target
= control target key end

     0   :  { %vm164_vm0 = vcmask 1042432   ;;  %vm67_vm1 = vcmask 23552   ;;  %s1874_s0 = inlined_call_operand.vmem [shape: f32[256,3], index: 0, kind: input, shape index: {}]   ;;  %s1875_s1 = inlined_call_operand.vmem [shape: f32[3,128], index: 1, kind: input, shape index: {}]   ;;  %s1876_s2 = inlined_call_operand.vmem [shape: f32[1,128], index: 2, kind: input, shape index: {}]   ;;  %s1877_s3 = inlined_call_operand.vmem [shape: f32[128,128], index: 3, kind: input, shape index: {}]   ;;  %s1878_s4 = inlined_call_operand.vmem [shape: f32[1,128], index: 4, kind: input, shape index: {}]   ;;  %s1879_s5 = inlined_call_operand.vmem [shape: f32[128,128], index: 5, kind: input, shape index: {}]   ;;  %s1880_s6 = inlined_call_operand.vmem [shape: f32[1,128], index: 6, kind: input, shape index: {}]   ;;  %s1881_s7 = inlined_call_operand.hbm [shape: f32[256,128], index: 7, kind: output, shape index: {}]  }
   0x1   :  { %v59_v0 = vld [vmem:[%s1875_s1] sm:$0x7]  ;;  %v28_v2 = vld [vmem:[%s1874_s0 + $0x8] sm:$0xff]  ;;  %v29_v3 = vld [vmem:[%s1874_s0 + $0x10] sm:$0xff] }
   0x2   :  { %v27_v1 = vld [vmem:[%s1874_s0] sm:$0xff]  ;;  %1166 = vmatprep.subr.msk.mxu0 %vm164_vm0, %v59_v0  ;;  %1440 = vmatprep.subr.msk.mxu1 %vm164_vm0, %v59_v0  ;;  %v30_v4 = vld [vmem:[%s1874_s0 + $0x18] sm:$0xff]  ;;  %v44_v7 = vld [vmem:[%s1874_s0 + $0x88] sm:$0xff] }
   0x3   :  { %1168 = vmatprep.mubr.msk.f32.mxu0 %vm67_vm1, %v27_v1  ;;  %1167 = vmatpush3.msk.msra.mxu0 %vm164_vm0, %v59_v0  ;;  %v31_v5 = vld [vmem:[%s1874_s0 + $0x20] sm:$0xff]  ;;  %v45_v8 = vld [vmem:[%s1874_s0 + $0x90] sm:$0xff]  ;;  %v32_v9 = vld [vmem:[%s1874_s0 + $0x28] sm:$0xff] }
   0x4   :  { %1169 = vmatmul.mubr.msk.f32.vlgmr.msra.gmra.mrb[0].mxu0 %vm67_vm1, %v28_v2  ;;  %1441 = vmatpush3.msk.msra.mxu1 %vm164_vm0, %v59_v0  ;;  %v43_v6 = vld [vmem:[%s1874_s0 + $0x80] sm:$0xff]  ;;  %v46_v10 = vld [vmem:[%s1874_s0 + $0x98] sm:$0xff]  ;;  %v33_v11 = vld [vmem:[%s1874_s0 + $0x30] sm:$0xff] }
   0x5   :  { %1171 = vmatprep.mubr.msk.f32.mxu0 %vm67_vm1, %v29_v3  ;;  %1192 = vmatprep.mubr.msk.f32.mxu1 %vm67_vm1, %v43_v6  ;;  %v47_v12 = vld [vmem:[%s1874_s0 + $0xa0] sm:$0xff]  ;;  %v426_v14 = vld [vmem:[%s1877_s3 + $0x8] sm:$0xff]  ;;  %v427_v15 = vld [vmem:[%s1877_s3 + $0x10] sm:$0xff] }
   0x6   :  { %1193 = vmatmul.mubr.msk.f32.vlgmr.msra.gmra.mrb[0].mxu1 %vm67_vm1, %v44_v7  ;;  %v425_v13 = vld [vmem:[%s1877_s3] sm:$0xff]  ;;  %v34_v16 = vld [vmem:[%s1874_s0 + $0x38] sm:$0xff]  ;;  %v48_v17 = vld [vmem:[%s1874_s0 + $0xa8] sm:$0xff] }
   0x7   :  { %1195 = vmatprep.mubr.msk.f32.mxu1 %vm67_vm1, %v45_v8  ;;  %v1376_v18 = vpack.c.bf16 %v426_v14, %v425_v13  ;;  %v428_v19 = vld [vmem:[%s1877_s3 + $0x18] sm:$0xff]  ;;  %v35_v20 = vld [vmem:[%s1874_s0 + $0x40] sm:$0xff]  ;;  %v49_v21 = vld [vmem:[%s1874_s0 + $0xb0] sm:$0xff] }
   0x8   :  { %1172 = vmatmul.mubr.msk.f32.gmra.mrb[2].mxu0 %vm67_vm1, %v30_v4  ;;  %v1380_v22 = vpack.c.bf16 %v428_v19, %v427_v15  ;;  %v429_v23 = vld [vmem:[%s1877_s3 + $0x20] sm:$0xff]  ;;  %v430_v24 = vld [vmem:[%s1877_s3 + $0x28] sm:$0xff] }
   0x9   :  { %1174 = vmatprep.mubr.msk.f32.mxu0 %vm67_vm1, %v31_v5  ;;  %1377 = vmatprep.subr.bf16.mxu1 %v1376_v18 }
   0xa   :  { %1196 = vmatmul.mubr.msk.f32.gmra.mrb[2].mxu1 %vm67_vm1, %v46_v10 }
   0xb   :  { %1198 = vmatprep.mubr.msk.f32.mxu1 %vm67_vm1, %v47_v12 }
   0xc   :  { %1175 = vmatmul.mubr.msk.f32.gmra.mrb[4].mxu0 %vm67_vm1, %v32_v9 }
   0xd   :  { %1177 = vmatprep.mubr.msk.f32.mxu0 %vm67_vm1, %v33_v11 }
   0xe   :  { %1199 = vmatmul.mubr.msk.f32.gmra.mrb[4].mxu1 %vm67_vm1, %v48_v17 }
  0x10   :  { %1178 = vmatmul.mubr.msk.f32.gmra.mrb[6].mxu0 %vm67_vm1, %v34_v16 }
  0x11   :  { %12 = vsyncpa [#allocation3], 0  ;;  %1180 = vmatprep.mubr.msk.f32.mxu0 %vm67_vm1, %v35_v20  ;;  %v36_v25 = vld [vmem:[%s1874_s0 + $0x48] sm:$0xff]  ;;  %1201 = vmatprep.mubr.msk.f32.mxu1 %vm67_vm1, %v49_v21  ;;  %v50_v26 = vld [vmem:[%s1874_s0 + $0xb8] sm:$0xff]  ;;  %v1384_v29 = vpack.c.bf16 %v430_v24, %v429_v23 }
  0x12   :  { %v37_v27 = vld [vmem:[%s1874_s0 + $0x50] sm:$0xff]  ;;  %v51_v28 = vld [vmem:[%s1874_s0 + $0xc0] sm:$0xff]  ;;  %1379 = vmatpush3.bf16.msra.mxu1 %v1376_v18  ;;  %v432_v31 = vld [vmem:[%s1877_s3 + $0x38] sm:$0xff] }
  0x13   :  { %1381 = vmatprep.subr.bf16.mxu1 %v1380_v22  ;;  %1202 = vmatmul.mubr.msk.f32.gmra.mrb[6].mxu1 %vm67_vm1, %v50_v26  ;;  %v431_v30 = vld [vmem:[%s1877_s3 + $0x30] sm:$0xff]  ;;  %v38_v32 = vld [vmem:[%s1874_s0 + $0x58] sm:$0xff]  ;;  %v52_v33 = vld [vmem:[%s1874_s0 + $0xc8] sm:$0xff] }
  0x14   :  { %1181 = vmatmul.mubr.msk.f32.gmra.mrb[8].mxu0 %vm67_vm1, %v36_v25  ;;  %1204 = vmatprep.mubr.msk.f32.mxu1 %vm67_vm1, %v51_v28  ;;  %v39_v34 = vld [vmem:[%s1874_s0 + $0x60] sm:$0xff]  ;;  %v53_v35 = vld [vmem:[%s1874_s0 + $0xd0] sm:$0xff]  ;;  %v1388_v36 = vpack.c.bf16 %v432_v31, %v431_v30  ;;  %v434_v38 = vld [vmem:[%s1877_s3 + $0x48] sm:$0xff] }
  0x15   :  { %1183 = vmatprep.mubr.msk.f32.mxu0 %vm67_vm1, %v37_v27  ;;  %v433_v37 = vld [vmem:[%s1877_s3 + $0x40] sm:$0xff]  ;;  %v40_v39 = vld [vmem:[%s1874_s0 + $0x68] sm:$0xff]  ;;  %v54_v40 = vld [vmem:[%s1874_s0 + $0xd8] sm:$0xff] }
  0x16   :  { %1383 = vmatpush3.bf16.msra.mxu1 %v1380_v22  ;;  %v41_v41 = vld [vmem:[%s1874_s0 + $0x70] sm:$0xff]  ;;  %v55_v42 = vld [vmem:[%s1874_s0 + $0xe0] sm:$0xff]  ;;  %v1392_v43 = vpack.c.bf16 %v434_v38, %v433_v37  ;;  %v436_v45 = vld [vmem:[%s1877_s3 + $0x58] sm:$0xff] }
  0x17   :  { %1385 = vmatprep.subr.bf16.mxu1 %v1384_v29  ;;  %1205 = vmatmul.mubr.msk.f32.gmra.mrb[8].mxu1 %vm67_vm1, %v52_v33  ;;  %v435_v44 = vld [vmem:[%s1877_s3 + $0x50] sm:$0xff]  ;;  %v42_v46 = vld [vmem:[%s1874_s0 + $0x78] sm:$0xff]  ;;  %v56_v47 = vld [vmem:[%s1874_s0 + $0xe8] sm:$0xff] }
  0x18   :  { %1184 = vmatmul.mubr.msk.f32.gmra.mrb[10].mxu0 %vm67_vm1, %v38_v32  ;;  %1207 = vmatprep.mubr.msk.f32.mxu1 %vm67_vm1, %v53_v35  ;;  %v57_v48 = vld [vmem:[%s1874_s0 + $0xf0] sm:$0xff]  ;;  %v1396_v49 = vpack.c.bf16 %v436_v45, %v435_v44  ;;  %v437_v50 = vld [vmem:[%s1877_s3 + $0x60] sm:$0xff]  ;;  %v438_v51 = vld [vmem:[%s1877_s3 + $0x68] sm:$0xff] }
  0x19   :  { %1186 = vmatprep.mubr.msk.f32.mxu0 %vm67_vm1, %v39_v34  ;;  %v58_v52 = vld [vmem:[%s1874_s0 + $0xf8] sm:$0xff]  ;;  %v1400_v53 = vpack.c.bf16 %v438_v51, %v437_v50  ;;  %v439_v54 = vld [vmem:[%s1877_s3 + $0x70] sm:$0xff]  ;;  %v705_v57 = vld [vmem:[%s1879_s5] sm:$0xff] }
  0x1a   :  { %1387 = vmatpush3.bf16.msra.mxu1 %v1384_v29  ;;  %v440_v55 = vld [vmem:[%s1877_s3 + $0x78] sm:$0xff]  ;;  %v706_v58 = vld [vmem:[%s1879_s5 + $0x8] sm:$0xff]  ;;  %v707_v59 = vld [vmem:[%s1879_s5 + $0x10] sm:$0xff] }
  0x1b   :  { %1389 = vmatprep.subr.bf16.mxu1 %v1388_v36  ;;  %1208 = vmatmul.mubr.msk.f32.gmra.mrb[10].mxu1 %vm67_vm1, %v54_v40  ;;  %v1404_v56 = vpack.c.bf16 %v440_v55, %v439_v54  ;;  %v1408_v60 = vpack.c.bf16 %v706_v58, %v705_v57  ;;  %v708_v61 = vld [vmem:[%s1879_s5 + $0x18] sm:$0xff]  ;;  %v709_v63 = vld [vmem:[%s1879_s5 + $0x20] sm:$0xff]  ;;  %v710_v0 = vld [vmem:[%s1879_s5 + $0x28] sm:$0xff] }
  0x1c   :  { %1187 = vmatmul.mubr.msk.f32.gmra.mrb[12].mxu0 %vm67_vm1, %v40_v39  ;;  %1210 = vmatprep.mubr.msk.f32.mxu1 %vm67_vm1, %v55_v42  ;;  %v1412_v62 = vpack.c.bf16 %v708_v61, %v707_v59  ;;  %v1416_v1 = vpack.c.bf16 %v710_v0, %v709_v63  ;;  %v711_v2 = vld [vmem:[%s1879_s5 + $0x30] sm:$0xff]  ;;  %v712_v3 = vld [vmem:[%s1879_s5 + $0x38] sm:$0xff]  ;;  %v713_v5 = vld [vmem:[%s1879_s5 + $0x40] sm:$0xff] }
  0x1d   :  { %1189 = vmatprep.mubr.msk.f32.mxu0 %vm67_vm1, %v41_v41  ;;  %1409 = vmatprep.subr.bf16.mxu0 %v1408_v60  ;;  %v1420_v4 = vpack.c.bf16 %v712_v3, %v711_v2  ;;  %v714_v6 = vld [vmem:[%s1879_s5 + $0x48] sm:$0xff]  ;;  %v715_v8 = vld [vmem:[%s1879_s5 + $0x50] sm:$0xff]  ;;  %v716_v9 = vld [vmem:[%s1879_s5 + $0x58] sm:$0xff] }
  0x1e   :  { %1391 = vmatpush3.bf16.msra.mxu1 %v1388_v36  ;;  %1411 = vmatpush3.bf16.msra.mxu0 %v1408_v60  ;;  %v1424_v7 = vpack.c.bf16 %v714_v6, %v713_v5  ;;  %v1428_v10 = vpack.c.bf16 %v716_v9, %v715_v8  ;;  %v717_v11 = vld [vmem:[%s1879_s5 + $0x60] sm:$0xff]  ;;  %v718_v12 = vld [vmem:[%s1879_s5 + $0x68] sm:$0xff] }
  0x1f   :  { %1393 = vmatprep.subr.bf16.mxu1 %v1392_v43  ;;  %1211 = vmatmul.mubr.msk.f32.gmra.mrb[12].mxu1 %vm67_vm1, %v56_v47  ;;  %v1432_v13 = vpack.c.bf16 %v718_v12, %v717_v11  ;;  %v1736_v14 = vld [vmem:[%s1876_s2] ss:$0 sm:$0xff] }
  0x20   :  { %1190 = vmatmul.mubr.msk.f32.gmra.mrb[14].mxu0 %vm67_vm1, %v42_v46  ;;  %1213 = vmatprep.mubr.msk.f32.mxu1 %vm67_vm1, %v57_v48 }
  0x21   :  { %1413 = vmatprep.subr.bf16.mxu0 %v1412_v62 }
  0x22   :  { %1395 = vmatpush3.bf16.msra.mxu1 %v1392_v43  ;;  %1415 = vmatpush3.bf16.msra.mxu0 %v1412_v62 }
  0x23   :  { %1397 = vmatprep.subr.bf16.mxu1 %v1396_v49  ;;  %1214 = vmatmul.mubr.msk.f32.gmra.mrb[14].mxu1 %vm67_vm1, %v58_v52 }
  0x24   :  { %1417 = vmatprep.subr.bf16.mxu0 %v1416_v1 }
  0x26   :  { %1399 = vmatpush3.bf16.msra.mxu1 %v1396_v49  ;;  %1419 = vmatpush3.bf16.msra.mxu0 %v1416_v1 }
  0x27   :  { %1401 = vmatprep.subr.bf16.mxu1 %v1400_v53  ;;  %1421 = vmatprep.subr.bf16.mxu0 %v1420_v4 }
  0x2a   :  { %1403 = vmatpush3.bf16.msra.mxu1 %v1400_v53  ;;  %1423 = vmatpush3.bf16.msra.mxu0 %v1420_v4 }
  0x2b   :  { %1405 = vmatprep.subr.bf16.mxu1 %v1404_v56  ;;  %1425 = vmatprep.subr.bf16.mxu0 %v1424_v7 }
  0x2e   :  { %1407 = vmatpush3.bf16.msra.mxu1 %v1404_v56  ;;  %1427 = vmatpush3.bf16.msra.mxu0 %v1424_v7 }
  0x2f   :  { %1429 = vmatprep.subr.bf16.mxu0 %v1428_v10 }
  0x32   :  { %1431 = vmatpush3.bf16.msra.mxu0 %v1428_v10 }
  0x33   :  { %1433 = vmatprep.subr.bf16.mxu0 %v1432_v13 }
  0x36   :  { %1435 = vmatpush3.bf16.msra.mxu0 %v1432_v13 }
  0xd7   :  { %v1170_v15 = vpop.f32.mrb[0].mxu0 }
  0xd8   :  { %v240_v16 = vadd.f32 %v1170_v15, %v1736_v14  ;;  %v234_v17 = vpop.f32.mrb[1].mxu0 }
  0xd9   :  { %v235_v18 = vadd.f32 %v1736_v14, %v234_v17  ;;  %v1740_v21 = vpop.f32.mrb[0].mxu1 }
  0xda   :  { %v394_v22 = vmax.f32 %v240_v16, 0.0  ;;  %v314_v25 = vpop.f32.mrb[1].mxu1 }
  0xdb   :  { %v393_v19 = vmax.f32 %v235_v18, 0.0  ;;  %v1173_v20 = vpop.f32.mrb[2].mxu0  ;;  %v315_v5 = vadd.f32 %v1736_v14, %v314_v25  ;;  %v320_v18 = vadd.f32 %v1740_v21, %v1736_v14 }
  0xdc   :  { %v250_v23 = vadd.f32 %v1173_v20, %v1736_v14  ;;  %v244_v24 = vpop.f32.mrb[3].mxu0 }
  0xdd   :  { %v245_v26 = vadd.f32 %v1736_v14, %v244_v24  ;;  %1248 = vmatprep.mubr.f32.mxu1 %v393_v19  ;;  %v1744_v29 = vpop.f32.mrb[2].mxu1  ;;  %v409_v13 = vmax.f32 %v315_v5, 0.0 }
  0xde   :  { %1249 = vmatmul.mubr.f32.vlgmr.msra.gmra.mrb[16].mxu1 %v394_v22  ;;  %v396_v30 = vmax.f32 %v250_v23, 0.0  ;;  %v324_v33 = vpop.f32.mrb[3].mxu1  ;;  %v410_v23 = vmax.f32 %v320_v18, 0.0  ;;  %v330_v24 = vadd.f32 %v1744_v29, %v1736_v14 }
  0xdf   :  { %v395_v27 = vmax.f32 %v245_v26, 0.0  ;;  %v1176_v28 = vpop.f32.mrb[4].mxu0  ;;  %v325_v15 = vadd.f32 %v1736_v14, %v324_v33 }
  0xe0   :  { %v260_v31 = vadd.f32 %v1176_v28, %v1736_v14  ;;  %v254_v32 = vpop.f32.mrb[5].mxu0 }
  0xe1   :  { %v255_v34 = vadd.f32 %v1736_v14, %v254_v32  ;;  %1251 = vmatprep.mubr.f32.mxu1 %v395_v27  ;;  %v1748_v37 = vpop.f32.mrb[4].mxu1  ;;  %v411_v20 = vmax.f32 %v325_v15, 0.0  ;;  %v412_v27 = vmax.f32 %v330_v24, 0.0 }
  0xe2   :  { %1252 = vmatmul.mubr.f32.gmra.mrb[18].mxu1 %v396_v30  ;;  %v398_v38 = vmax.f32 %v260_v31, 0.0  ;;  %v334_v41 = vpop.f32.mrb[5].mxu1  ;;  %v340_v21 = vadd.f32 %v1748_v37, %v1736_v14 }
  0xe3   :  { %v397_v35 = vmax.f32 %v255_v34, 0.0  ;;  %v1179_v36 = vpop.f32.mrb[6].mxu0  ;;  %v335_v22 = vadd.f32 %v1736_v14, %v334_v41 }
  0xe4   :  { %v270_v39 = vadd.f32 %v1179_v36, %v1736_v14  ;;  %v264_v40 = vpop.f32.mrb[7].mxu0  ;;  %v414_v31 = vmax.f32 %v340_v21, 0.0 }
  0xe5   :  { %v265_v42 = vadd.f32 %v1736_v14, %v264_v40  ;;  %1254 = vmatprep.mubr.f32.mxu1 %v397_v35  ;;  %v413_v25 = vmax.f32 %v335_v22, 0.0 }
  0xe6   :  { %1255 = vmatmul.mubr.f32.gmra.mrb[20].mxu1 %v398_v38  ;;  %v1752_v45 = vpop.f32.mrb[6].mxu1  ;;  %v400_v46 = vmax.f32 %v270_v39, 0.0 }
  0xe7   :  { %v399_v43 = vmax.f32 %v265_v42, 0.0  ;;  %v1182_v44 = vpop.f32.mrb[8].mxu0  ;;  %v344_v49 = vpop.f32.mrb[7].mxu1  ;;  %v350_v32 = vadd.f32 %v1752_v45, %v1736_v14 }
  0xe8   :  { %v280_v47 = vadd.f32 %v1182_v44, %v1736_v14  ;;  %v274_v48 = vpop.f32.mrb[9].mxu0  ;;  %v345_v26 = vadd.f32 %v1736_v14, %v344_v49  ;;  %v720_v49 = vld [vmem:[%s1879_s5 + $0x78] sm:$0xff] }
  0xe9   :  { %v275_v50 = vadd.f32 %v1736_v14, %v274_v48  ;;  %1257 = vmatprep.mubr.f32.mxu1 %v399_v43  ;;  %v416_v34 = vmax.f32 %v350_v32, 0.0  ;;  %v719_v48 = vld [vmem:[%s1879_s5 + $0x70] sm:$0xff] }
  0xea   :  { %1258 = vmatmul.mubr.f32.gmra.mrb[22].mxu1 %v400_v46  ;;  %v1206_v53 = vpop.f32.mrb[8].mxu1  ;;  %v402_v54 = vmax.f32 %v280_v47, 0.0  ;;  %v415_v28 = vmax.f32 %v345_v26, 0.0 }
  0xeb   :  { %v401_v51 = vmax.f32 %v275_v50, 0.0  ;;  %v1185_v52 = vpop.f32.mrb[10].mxu0  ;;  %v354_v57 = vpop.f32.mrb[9].mxu1  ;;  %v360_v35 = vadd.f32 %v1206_v53, %v1736_v14  ;;  %v1436_v50 = vpack.c.bf16 %v720_v49, %v719_v48 }
  0xec   :  { %v290_v55 = vadd.f32 %v1185_v52, %v1736_v14  ;;  %v284_v56 = vpop.f32.mrb[11].mxu0  ;;  %v355_v30 = vadd.f32 %v1736_v14, %v354_v57 }
  0xed   :  { %v285_v58 = vadd.f32 %v1736_v14, %v284_v56  ;;  %1260 = vmatprep.mubr.f32.mxu1 %v401_v51  ;;  %v418_v38 = vmax.f32 %v360_v35, 0.0  ;;  %1437 = vmatprep.subr.bf16.mxu0 %v1436_v50  ;;  %v1791_v51 = vld [vmem:[%s1878_s4] ss:$0 sm:$0xff] }
  0xee   :  { %1261 = vmatmul.mubr.f32.gmra.mrb[24].mxu1 %v402_v54  ;;  %v1209_v61 = vpop.f32.mrb[10].mxu1  ;;  %v404_v62 = vmax.f32 %v290_v55, 0.0  ;;  %v417_v29 = vmax.f32 %v355_v30, 0.0  ;;  %1439 = vmatpush3.bf16.msra.mxu0 %v1436_v50 }
  0xef   :  { %v403_v59 = vmax.f32 %v285_v58, 0.0  ;;  %v1188_v60 = vpop.f32.mrb[12].mxu0  ;;  %v364_v1 = vpop.f32.mrb[11].mxu1  ;;  %v370_v39 = vadd.f32 %v1209_v61, %v1736_v14 }
  0xf0   :  { %v300_v63 = vadd.f32 %v1188_v60, %v1736_v14  ;;  %v294_v0 = vpop.f32.mrb[13].mxu0  ;;  %v365_v33 = vadd.f32 %v1736_v14, %v364_v1 }
  0xf1   :  { %v295_v2 = vadd.f32 %v1736_v14, %v294_v0  ;;  %1263 = vmatprep.mubr.f32.mxu1 %v403_v59  ;;  %v420_v42 = vmax.f32 %v370_v39, 0.0 }
  0xf2   :  { %1264 = vmatmul.mubr.f32.gmra.mrb[26].mxu1 %v404_v62  ;;  %v1212_v6 = vpop.f32.mrb[12].mxu1  ;;  %v406_v7 = vmax.f32 %v300_v63, 0.0  ;;  %v419_v36 = vmax.f32 %v365_v33, 0.0 }
  0xf3   :  { %v405_v3 = vmax.f32 %v295_v2, 0.0  ;;  %v1191_v4 = vpop.f32.mrb[14].mxu0  ;;  %v374_v10 = vpop.f32.mrb[13].mxu1  ;;  %v380_v43 = vadd.f32 %v1212_v6, %v1736_v14 }
  0xf4   :  { %v310_v8 = vadd.f32 %v1191_v4, %v1736_v14  ;;  %v304_v9 = vpop.f32.mrb[15].mxu0  ;;  %v375_v37 = vadd.f32 %v1736_v14, %v374_v10 }
  0xf5   :  { %v305_v11 = vadd.f32 %v1736_v14, %v304_v9  ;;  %1266 = vmatprep.mubr.f32.mxu1 %v405_v3  ;;  %v422_v45 = vmax.f32 %v380_v43, 0.0 }
  0xf6   :  { %1267 = vmatmul.mubr.f32.gmra.mrb[28].mxu1 %v406_v7  ;;  %v1215_v16 = vpop.f32.mrb[14].mxu1  ;;  %v408_v17 = vmax.f32 %v310_v8, 0.0  ;;  %v421_v40 = vmax.f32 %v375_v37, 0.0 }
  0xf7   :  { %v407_v12 = vmax.f32 %v305_v11, 0.0  ;;  %v384_v19 = vpop.f32.mrb[15].mxu1  ;;  %v390_v46 = vadd.f32 %v1215_v16, %v1736_v14 }
  0xf8   :  { %v385_v41 = vadd.f32 %v1736_v14, %v384_v19 }
  0xf9   :  { %1269 = vmatprep.mubr.f32.mxu1 %v407_v12  ;;  %v424_v47 = vmax.f32 %v390_v46, 0.0 }
  0xfa   :  { %1270 = vmatmul.mubr.f32.gmra.mrb[30].mxu1 %v408_v17  ;;  %v423_v44 = vmax.f32 %v385_v41, 0.0 }
  0xfb   :  { %1272 = vmatprep.mubr.f32.mxu1 %v409_v13 }
  0xfe   :  { %1273 = vmatmul.mubr.f32.gmra.mrb[32].mxu1 %v410_v23 }
  0xff   :  { %1275 = vmatprep.mubr.f32.mxu1 %v411_v20 }
 0x102   :  { %1276 = vmatmul.mubr.f32.gmra.mrb[34].mxu1 %v412_v27 }
 0x103   :  { %1278 = vmatprep.mubr.f32.mxu1 %v413_v25 }
 0x106   :  { %1279 = vmatmul.mubr.f32.gmra.mrb[36].mxu1 %v414_v31 }
 0x107   :  { %1281 = vmatprep.mubr.f32.mxu1 %v415_v28 }
 0x10a   :  { %1282 = vmatmul.mubr.f32.gmra.mrb[38].mxu1 %v416_v34 }
 0x10b   :  { %1284 = vmatprep.mubr.f32.mxu1 %v417_v29 }
 0x10e   :  { %1285 = vmatmul.mubr.f32.gmra.mrb[40].mxu1 %v418_v38 }
 0x10f   :  { %1287 = vmatprep.mubr.f32.mxu1 %v419_v36 }
 0x112   :  { %1288 = vmatmul.mubr.f32.gmra.mrb[42].mxu1 %v420_v42 }
 0x113   :  { %1290 = vmatprep.mubr.f32.mxu1 %v421_v40 }
 0x116   :  { %1291 = vmatmul.mubr.f32.gmra.mrb[44].mxu1 %v422_v45 }
 0x117   :  { %1293 = vmatprep.mubr.f32.mxu1 %v423_v44 }
 0x11a   :  { %1294 = vmatmul.mubr.f32.gmra.mrb[46].mxu1 %v424_v47 }
 0x1b1   :  { %v1250_v14 = vpop.f32.mrb[16].mxu1 }
 0x1b2   :  { %v520_v52 = vadd.f32 %v1250_v14, %v1791_v51  ;;  %v514_v53 = vpop.f32.mrb[17].mxu1 }
 0x1b3   :  { %v515_v54 = vadd.f32 %v1791_v51, %v514_v53 }
 0x1b4   :  { %v674_v57 = vmax.f32 %v520_v52, 0.0 }
 0x1b5   :  { %v673_v55 = vmax.f32 %v515_v54, 0.0  ;;  %v1253_v56 = vpop.f32.mrb[18].mxu1 }
 0x1b6   :  { %v530_v58 = vadd.f32 %v1253_v56, %v1791_v51  ;;  %v524_v59 = vpop.f32.mrb[19].mxu1 }
 0x1b7   :  { %v525_v60 = vadd.f32 %v1791_v51, %v524_v59  ;;  %1328 = vmatprep.mubr.f32.mxu0 %v673_v55 }
 0x1b8   :  { %1329 = vmatmul.mubr.f32.vlgmr.msra.gmra.mrb[16].mxu0 %v674_v57  ;;  %v676_v63 = vmax.f32 %v530_v58, 0.0 }
 0x1b9   :  { %v675_v61 = vmax.f32 %v525_v60, 0.0  ;;  %v1256_v62 = vpop.f32.mrb[20].mxu1 }
 0x1ba   :  { %v540_v0 = vadd.f32 %v1256_v62, %v1791_v51  ;;  %v534_v1 = vpop.f32.mrb[21].mxu1 }
 0x1bb   :  { %v535_v2 = vadd.f32 %v1791_v51, %v534_v1  ;;  %1331 = vmatprep.mubr.f32.mxu0 %v675_v61 }
 0x1bc   :  { %1332 = vmatmul.mubr.f32.gmra.mrb[18].mxu0 %v676_v63  ;;  %v678_v5 = vmax.f32 %v540_v0, 0.0 }
 0x1bd   :  { %v677_v3 = vmax.f32 %v535_v2, 0.0  ;;  %v1259_v4 = vpop.f32.mrb[22].mxu1 }
 0x1be   :  { %v550_v6 = vadd.f32 %v1259_v4, %v1791_v51  ;;  %v544_v7 = vpop.f32.mrb[23].mxu1 }
 0x1bf   :  { %v545_v8 = vadd.f32 %v1791_v51, %v544_v7  ;;  %1334 = vmatprep.mubr.f32.mxu0 %v677_v3 }
 0x1c0   :  { %1335 = vmatmul.mubr.f32.gmra.mrb[20].mxu0 %v678_v5  ;;  %v680_v11 = vmax.f32 %v550_v6, 0.0 }
 0x1c1   :  { %v679_v9 = vmax.f32 %v545_v8, 0.0  ;;  %v1262_v10 = vpop.f32.mrb[24].mxu1 }
 0x1c2   :  { %v560_v12 = vadd.f32 %v1262_v10, %v1791_v51  ;;  %v554_v13 = vpop.f32.mrb[25].mxu1 }
 0x1c3   :  { %v555_v15 = vadd.f32 %v1791_v51, %v554_v13  ;;  %1337 = vmatprep.mubr.f32.mxu0 %v679_v9 }
 0x1c4   :  { %1338 = vmatmul.mubr.f32.gmra.mrb[22].mxu0 %v680_v11  ;;  %v682_v18 = vmax.f32 %v560_v12, 0.0 }
 0x1c5   :  { %v681_v16 = vmax.f32 %v555_v15, 0.0  ;;  %v1265_v17 = vpop.f32.mrb[26].mxu1 }
 0x1c6   :  { %v570_v19 = vadd.f32 %v1265_v17, %v1791_v51  ;;  %v564_v20 = vpop.f32.mrb[27].mxu1 }
 0x1c7   :  { %v565_v22 = vadd.f32 %v1791_v51, %v564_v20  ;;  %1340 = vmatprep.mubr.f32.mxu0 %v681_v16 }
 0x1c8   :  { %1341 = vmatmul.mubr.f32.gmra.mrb[24].mxu0 %v682_v18  ;;  %v684_v25 = vmax.f32 %v570_v19, 0.0 }
 0x1c9   :  { %v683_v23 = vmax.f32 %v565_v22, 0.0  ;;  %v1268_v24 = vpop.f32.mrb[28].mxu1  ;;  %v1828_v22 = vld [vmem:[%s1880_s6] ss:$0 sm:$0xff]  ;;  %s1469_s6 = smov [#allocation2]  }
 0x1ca   :  { %v580_v26 = vadd.f32 %v1268_v24, %v1791_v51  ;;  %v574_v27 = vpop.f32.mrb[29].mxu1  ;;  %s990_s9 = sshll.u32 %s1469_s6, 4  ;;  %s991_s9 = int_to_ptr.vmem [resolvable:$true] %s990_s9 }
 0x1cb   :  { %v575_v21 = vadd.f32 %v1791_v51, %v574_v27  ;;  %1343 = vmatprep.mubr.f32.mxu0 %v683_v23  ;;  %s1445_s10 = scalar_lea.vmem %s991_s9, 4096  ;;  %p1450_p1 = scmp.lt.s32.totalorder %s991_s9, %s991_s9 }
 0x1cc   :  { %1344 = vmatmul.mubr.f32.gmra.mrb[26].mxu0 %v684_v25  ;;  %v686_v31 = vmax.f32 %v580_v26, 0.0  ;;  %p1446_p0 = scmp.ne.s32.totalorder %s991_s9, %s1445_s10  ;;  %p1451_p2 = scmp.lt.s32.totalorder %s1445_s10, %s1445_s10 }
 0x1cd   :  { %v685_v28 = vmax.f32 %v575_v21, 0.0  ;;  %v1271_v30 = vpop.f32.mrb[30].mxu1 }
 0x1ce   :  { %v590_v32 = vadd.f32 %v1271_v30, %v1791_v51  ;;  %v584_v29 = vpop.f32.mrb[31].mxu1  ;;  %p1452_p3 = por %p1451_p2, %p1450_p1 }
 0x1cf   :  { %v585_v33 = vadd.f32 %v1791_v51, %v584_v29  ;;  %1346 = vmatprep.mubr.f32.mxu0 %v685_v28 }
 0x1d0   :  { %1347 = vmatmul.mubr.f32.gmra.mrb[28].mxu0 %v686_v31  ;;  %v688_v36 = vmax.f32 %v590_v32, 0.0  ;;  %p1453_p4 = pnand %p1452_p3, %p1446_p0 }
 0x1d1   :  { %v687_v34 = vmax.f32 %v585_v33, 0.0  ;;  %v1274_v35 = vpop.f32.mrb[32].mxu1 }
 0x1d2   :  { %v600_v37 = vadd.f32 %v1274_v35, %v1791_v51  ;;  %v594_v38 = vpop.f32.mrb[33].mxu1 }
 0x1d3   :  { %v595_v39 = vadd.f32 %v1791_v51, %v594_v38  ;;  %1349 = vmatprep.mubr.f32.mxu0 %v687_v34 }
 0x1d4   :  { %1350 = vmatmul.mubr.f32.gmra.mrb[30].mxu0 %v688_v36  ;;  %v690_v42 = vmax.f32 %v600_v37, 0.0 }
 0x1d5   :  { %v689_v40 = vmax.f32 %v595_v39, 0.0  ;;  %v1277_v41 = vpop.f32.mrb[34].mxu1 }
 0x1d6   :  { %v610_v43 = vadd.f32 %v1277_v41, %v1791_v51  ;;  %v604_v44 = vpop.f32.mrb[35].mxu1 }
 0x1d7   :  { %v605_v45 = vadd.f32 %v1791_v51, %v604_v44  ;;  %1352 = vmatprep.mubr.f32.mxu0 %v689_v40 }
 0x1d8   :  { %1353 = vmatmul.mubr.f32.gmra.mrb[32].mxu0 %v690_v42  ;;  %v692_v48 = vmax.f32 %v610_v43, 0.0 }
 0x1d9   :  { %v691_v46 = vmax.f32 %v605_v45, 0.0  ;;  %v1280_v47 = vpop.f32.mrb[36].mxu1 }
 0x1da   :  { %v620_v49 = vadd.f32 %v1280_v47, %v1791_v51  ;;  %v614_v50 = vpop.f32.mrb[37].mxu1 }
 0x1db   :  { %v615_v14 = vadd.f32 %v1791_v51, %v614_v50  ;;  %1355 = vmatprep.mubr.f32.mxu0 %v691_v46 }
 0x1dc   :  { %1356 = vmatmul.mubr.f32.gmra.mrb[34].mxu0 %v692_v48  ;;  %v694_v54 = vmax.f32 %v620_v49, 0.0 }
 0x1dd   :  { %v693_v52 = vmax.f32 %v615_v14, 0.0  ;;  %v1283_v53 = vpop.f32.mrb[38].mxu1 }
 0x1de   :  { %v630_v55 = vadd.f32 %v1283_v53, %v1791_v51  ;;  %v624_v56 = vpop.f32.mrb[39].mxu1 }
 0x1df   :  { %v625_v57 = vadd.f32 %v1791_v51, %v624_v56  ;;  %1358 = vmatprep.mubr.f32.mxu0 %v693_v52 }
 0x1e0   :  { %1359 = vmatmul.mubr.f32.gmra.mrb[36].mxu0 %v694_v54  ;;  %v696_v60 = vmax.f32 %v630_v55, 0.0 }
 0x1e1   :  { %v695_v58 = vmax.f32 %v625_v57, 0.0  ;;  %v1286_v59 = vpop.f32.mrb[40].mxu1 }
 0x1e2   :  { %v640_v61 = vadd.f32 %v1286_v59, %v1791_v51  ;;  %v634_v62 = vpop.f32.mrb[41].mxu1 }
 0x1e3   :  { %v635_v63 = vadd.f32 %v1791_v51, %v634_v62  ;;  %1361 = vmatprep.mubr.f32.mxu0 %v695_v58 }
 0x1e4   :  { %1362 = vmatmul.mubr.f32.gmra.mrb[38].mxu0 %v696_v60  ;;  %v698_v2 = vmax.f32 %v640_v61, 0.0 }
 0x1e5   :  { %v697_v0 = vmax.f32 %v635_v63, 0.0  ;;  %v1289_v1 = vpop.f32.mrb[42].mxu1 }
 0x1e6   :  { %v650_v3 = vadd.f32 %v1289_v1, %v1791_v51  ;;  %v644_v4 = vpop.f32.mrb[43].mxu1 }
 0x1e7   :  { %v645_v5 = vadd.f32 %v1791_v51, %v644_v4  ;;  %1364 = vmatprep.mubr.f32.mxu0 %v697_v0 }
 0x1e8   :  { %1365 = vmatmul.mubr.f32.gmra.mrb[40].mxu0 %v698_v2  ;;  %v700_v8 = vmax.f32 %v650_v3, 0.0 }
 0x1e9   :  { %v699_v6 = vmax.f32 %v645_v5, 0.0  ;;  %v1292_v7 = vpop.f32.mrb[44].mxu1 }
 0x1ea   :  { %v660_v9 = vadd.f32 %v1292_v7, %v1791_v51  ;;  %v654_v10 = vpop.f32.mrb[45].mxu1 }
 0x1eb   :  { %v655_v11 = vadd.f32 %v1791_v51, %v654_v10  ;;  %1367 = vmatprep.mubr.f32.mxu0 %v699_v6 }
 0x1ec   :  { %1368 = vmatmul.mubr.f32.gmra.mrb[42].mxu0 %v700_v8  ;;  %v702_v15 = vmax.f32 %v660_v9, 0.0 }
 0x1ed   :  { %v701_v12 = vmax.f32 %v655_v11, 0.0  ;;  %v1295_v13 = vpop.f32.mrb[46].mxu1 }
 0x1ee   :  { %v670_v16 = vadd.f32 %v1295_v13, %v1791_v51  ;;  %v664_v17 = vpop.f32.mrb[47].mxu1 }
 0x1ef   :  { %v665_v18 = vadd.f32 %v1791_v51, %v664_v17  ;;  %1370 = vmatprep.mubr.f32.mxu0 %v701_v12 }
 0x1f0   :  { %1371 = vmatmul.mubr.f32.gmra.mrb[44].mxu0 %v702_v15  ;;  %v704_v20 = vmax.f32 %v670_v16, 0.0 }
 0x1f1   :  { %v703_v19 = vmax.f32 %v665_v18, 0.0 }
 0x1f3   :  { %1373 = vmatprep.mubr.f32.mxu0 %v703_v19 }
 0x1f4   :  { %1374 = vmatmul.mubr.f32.gmra.mrb[46].mxu0 %v704_v20 }
 0x28b   :  { %v1330_v23 = vpop.f32.mrb[16].mxu0 }
 0x28c   :  { %v800_v24 = vadd.f32 %v1330_v23, %v1828_v22  ;;  %v794_v25 = vpop.f32.mrb[17].mxu0 }
 0x28d   :  { %v795_v26 = vadd.f32 %v1828_v22, %v794_v25 }
 0x28e   :  { %954 = vst [vmem:[#allocation2 + $0x8] sm:$0xff] %v800_v24 }
 0x28f   :  { %953 = vst [vmem:[#allocation2] sm:$0xff] %v795_v26  ;;  %v1333_v51 = vpop.f32.mrb[18].mxu0 }
 0x290   :  { %v810_v27 = vadd.f32 %v1333_v51, %v1828_v22  ;;  %v804_v21 = vpop.f32.mrb[19].mxu0 }
 0x291   :  { %v805_v28 = vadd.f32 %v1828_v22, %v804_v21 }
 0x292   :  { %956 = vst [vmem:[#allocation2 + $0x18] sm:$0xff] %v810_v27 }
 0x293   :  { %955 = vst [vmem:[#allocation2 + $0x10] sm:$0xff] %v805_v28  ;;  %v1336_v30 = vpop.f32.mrb[20].mxu0 }
 0x294   :  { %v820_v31 = vadd.f32 %v1336_v30, %v1828_v22  ;;  %v814_v32 = vpop.f32.mrb[21].mxu0 }
 0x295   :  { %v815_v29 = vadd.f32 %v1828_v22, %v814_v32 }
 0x296   :  { %958 = vst [vmem:[#allocation2 + $0x28] sm:$0xff] %v820_v31 }
 0x297   :  { %957 = vst [vmem:[#allocation2 + $0x20] sm:$0xff] %v815_v29  ;;  %v1339_v33 = vpop.f32.mrb[22].mxu0 }
 0x298   :  { %v830_v34 = vadd.f32 %v1339_v33, %v1828_v22  ;;  %v824_v35 = vpop.f32.mrb[23].mxu0 }
 0x299   :  { %v825_v36 = vadd.f32 %v1828_v22, %v824_v35 }
 0x29a   :  { %960 = vst [vmem:[#allocation2 + $0x38] sm:$0xff] %v830_v34 }
 0x29b   :  { %959 = vst [vmem:[#allocation2 + $0x30] sm:$0xff] %v825_v36  ;;  %v1342_v37 = vpop.f32.mrb[24].mxu0 }
 0x29c   :  { %v840_v38 = vadd.f32 %v1342_v37, %v1828_v22  ;;  %v834_v39 = vpop.f32.mrb[25].mxu0 }
 0x29d   :  { %v835_v40 = vadd.f32 %v1828_v22, %v834_v39 }
 0x29e   :  { %962 = vst [vmem:[#allocation2 + $0x48] sm:$0xff] %v840_v38 }
 0x29f   :  { %961 = vst [vmem:[#allocation2 + $0x40] sm:$0xff] %v835_v40  ;;  %v1345_v41 = vpop.f32.mrb[26].mxu0 }
 0x2a0   :  { %v850_v42 = vadd.f32 %v1345_v41, %v1828_v22  ;;  %v844_v43 = vpop.f32.mrb[27].mxu0 }
 0x2a1   :  { %v845_v44 = vadd.f32 %v1828_v22, %v844_v43 }
 0x2a2   :  { %964 = vst [vmem:[#allocation2 + $0x58] sm:$0xff] %v850_v42 }
 0x2a3   :  { %963 = vst [vmem:[#allocation2 + $0x50] sm:$0xff] %v845_v44  ;;  %v1348_v45 = vpop.f32.mrb[28].mxu0 }
 0x2a4   :  { %v860_v46 = vadd.f32 %v1348_v45, %v1828_v22  ;;  %v854_v47 = vpop.f32.mrb[29].mxu0 }
 0x2a5   :  { %v855_v48 = vadd.f32 %v1828_v22, %v854_v47 }
 0x2a6   :  { %966 = vst [vmem:[#allocation2 + $0x68] sm:$0xff] %v860_v46 }
 0x2a7   :  { %965 = vst [vmem:[#allocation2 + $0x60] sm:$0xff] %v855_v48  ;;  %v1351_v49 = vpop.f32.mrb[30].mxu0 }
 0x2a8   :  { %v870_v50 = vadd.f32 %v1351_v49, %v1828_v22  ;;  %v864_v14 = vpop.f32.mrb[31].mxu0 }
 0x2a9   :  { %v865_v52 = vadd.f32 %v1828_v22, %v864_v14 }
 0x2aa   :  { %968 = vst [vmem:[#allocation2 + $0x78] sm:$0xff] %v870_v50 }
 0x2ab   :  { %967 = vst [vmem:[#allocation2 + $0x70] sm:$0xff] %v865_v52  ;;  %v1354_v53 = vpop.f32.mrb[32].mxu0 }
 0x2ac   :  { %v880_v54 = vadd.f32 %v1354_v53, %v1828_v22  ;;  %v874_v55 = vpop.f32.mrb[33].mxu0 }
 0x2ad   :  { %v875_v56 = vadd.f32 %v1828_v22, %v874_v55 }
 0x2ae   :  { %970 = vst [vmem:[#allocation2 + $0x88] sm:$0xff] %v880_v54 }
 0x2af   :  { %969 = vst [vmem:[#allocation2 + $0x80] sm:$0xff] %v875_v56  ;;  %v1357_v57 = vpop.f32.mrb[34].mxu0 }
 0x2b0   :  { %v890_v58 = vadd.f32 %v1357_v57, %v1828_v22  ;;  %v884_v59 = vpop.f32.mrb[35].mxu0 }
 0x2b1   :  { %v885_v60 = vadd.f32 %v1828_v22, %v884_v59 }
 0x2b2   :  { %972 = vst [vmem:[#allocation2 + $0x98] sm:$0xff] %v890_v58 }
 0x2b3   :  { %971 = vst [vmem:[#allocation2 + $0x90] sm:$0xff] %v885_v60  ;;  %v1360_v61 = vpop.f32.mrb[36].mxu0 }
 0x2b4   :  { %v900_v62 = vadd.f32 %v1360_v61, %v1828_v22  ;;  %v894_v63 = vpop.f32.mrb[37].mxu0 }
 0x2b5   :  { %v895_v0 = vadd.f32 %v1828_v22, %v894_v63 }
 0x2b6   :  { %974 = vst [vmem:[#allocation2 + $0xa8] sm:$0xff] %v900_v62 }
 0x2b7   :  { %973 = vst [vmem:[#allocation2 + $0xa0] sm:$0xff] %v895_v0  ;;  %v1363_v1 = vpop.f32.mrb[38].mxu0 }
 0x2b8   :  { %v910_v2 = vadd.f32 %v1363_v1, %v1828_v22  ;;  %v904_v3 = vpop.f32.mrb[39].mxu0 }
 0x2b9   :  { %v905_v4 = vadd.f32 %v1828_v22, %v904_v3 }
 0x2ba   :  { %976 = vst [vmem:[#allocation2 + $0xb8] sm:$0xff] %v910_v2 }
 0x2bb   :  { %975 = vst [vmem:[#allocation2 + $0xb0] sm:$0xff] %v905_v4  ;;  %v1366_v5 = vpop.f32.mrb[40].mxu0 }
 0x2bc   :  { %v920_v6 = vadd.f32 %v1366_v5, %v1828_v22  ;;  %v914_v7 = vpop.f32.mrb[41].mxu0 }
 0x2bd   :  { %v915_v8 = vadd.f32 %v1828_v22, %v914_v7 }
 0x2be   :  { %978 = vst [vmem:[#allocation2 + $0xc8] sm:$0xff] %v920_v6 }
 0x2bf   :  { %977 = vst [vmem:[#allocation2 + $0xc0] sm:$0xff] %v915_v8  ;;  %v1369_v9 = vpop.f32.mrb[42].mxu0 }
 0x2c0   :  { %v930_v10 = vadd.f32 %v1369_v9, %v1828_v22  ;;  %v924_v11 = vpop.f32.mrb[43].mxu0 }
 0x2c1   :  { %v925_v12 = vadd.f32 %v1828_v22, %v924_v11 }
 0x2c2   :  { %980 = vst [vmem:[#allocation2 + $0xd8] sm:$0xff] %v930_v10 }
 0x2c3   :  { %979 = vst [vmem:[#allocation2 + $0xd0] sm:$0xff] %v925_v12  ;;  %v1372_v13 = vpop.f32.mrb[44].mxu0 }
 0x2c4   :  { %v940_v15 = vadd.f32 %v1372_v13, %v1828_v22  ;;  %v934_v16 = vpop.f32.mrb[45].mxu0 }
 0x2c5   :  { %v935_v17 = vadd.f32 %v1828_v22, %v934_v16 }
 0x2c6   :  { %982 = vst [vmem:[#allocation2 + $0xe8] sm:$0xff] %v940_v15 }
 0x2c7   :  { %981 = vst [vmem:[#allocation2 + $0xe0] sm:$0xff] %v935_v17  ;;  %v1375_v18 = vpop.f32.mrb[46].mxu0 }
 0x2c8   :  { %v950_v19 = vadd.f32 %v1375_v18, %v1828_v22  ;;  %v944_v20 = vpop.f32.mrb[47].mxu0 }
 0x2c9   :  { %v945_v23 = vadd.f32 %v1828_v22, %v944_v20 }
 0x2ca   :  { %984 = vst [vmem:[#allocation2 + $0xf8] sm:$0xff] %v950_v19 }
 0x2cb   :  { %983 = vst [vmem:[#allocation2 + $0xf0] sm:$0xff] %v945_v23 }
 0x2cc   :  { %1456 = shalt.err (!%p1453_p4)
}
 0x2cd   :  { %s1457_s13 = scalar_lea.hbm %s1881_s7, 4096 }
 0x2ce   :  { %p1458_p5 = scmp.ne.s32.totalorder %s1881_s7, %s1457_s13  ;;  %p1461_p6 = scmp.lt.u32.totalorder %s1457_s13, %s1881_s7 }
 0x2d0   :  { %p1463_p7 = pnand %p1461_p6, %p1458_p5 }
 0x2d2   :  { %1466 = shalt.err (!%p1463_p7)
}
 0x2d3   :  { %s1470_s18 = smov 128   ;;  %s1471_s19 = smov 8  }
 0x2d4   :  { %996 = dma.vmem_to_hbm [thread:$0]  %s991_s9, 4096, %s1881_s7, [#allocation3], %s1470_s18, %s1470_s18, %s1471_s19  }
 0x2d5   :  { %1467 = dma.done.wait [#allocation3], 4096  }
 0x2d6   :  { %1468 = vsyncadd [#allocation3], 4294963200 }
 0x2d7   :  { %1000 = vsyncpa [#allocation3], 1 }

</bundles_post_ra>
